<compile_context>
chip_gen: v5e
topology: v5e:2x2
jax: 0.10.0
libtpu: 0.0.40
codegen_flags: <defaults>
</compile_context>

<pallas_src>
import functools

import jax
import jax.numpy as jnp
from jax.experimental import pallas as pl
from jax.experimental.pallas import tpu as pltpu


_LANE = 128
_SUBLANE = 8
_NEG_INF = -1e30


def _round_up(n, m):
    return (n + m - 1) // m * m


def _vmem_capacity_bytes():
    try:
        return int(pltpu.get_tpu_info().vmem_capacity_bytes)
    except Exception:
        return 64 << 20  # conservative default (v7x per-TensorCore)


def _pick_tile_b(batch, resident_bytes, per_row_bytes, vmem_budget):
    """Largest batch tile (multiple of 8) that fits the VMEM budget while
    keeping enough grid steps for pipelining / megacore sharding."""
    b_pad8 = _round_up(max(batch, 1), _SUBLANE)
    if batch >= 512:
        target_steps = 4      # double-buffer overlap + 2 TCs on v7x
    elif batch >= 64:
        target_steps = 2
    else:
        target_steps = 1
    max_tile = max(_SUBLANE, _round_up(pl.cdiv(b_pad8, target_steps), _SUBLANE))
    tile = _SUBLANE
    for cand in (2048, 1024, 512, 256, 128, 64, 32, 16, 8):
        if cand > max_tile:
            continue
        if resident_bytes + cand * per_row_bytes <= vmem_budget:
            tile = cand
            break
    return min(tile, b_pad8)


def _gmm_cond_kernel(x_ref, w_ref, b_ref, *out_refs,
                     kd_pad, k_pad, min_scale, delta, compute_dtype):
    # In-kernel cast (x arrives f32 from HBM; bf16 only for the MXU feed).
    x = x_ref[...].astype(compute_dtype)
    # One fused, lane-dense matmul over the packed [loc | (logscale) | coefs] slab.
    out = jnp.dot(x, w_ref[...], preferred_element_type=jnp.float32)
    out = out + b_ref[...]                               # bias add in f32

    if delta:
        loc_ref, logcoef_ref, coef_ref = out_refs
    else:
        loc_ref, scale_ref, logcoef_ref, coef_ref = out_refs

    # Per-component means (padding lanes carry zeros; sliced off in wrapper).
    loc_ref[...] = out[:, 0:kd_pad].astype(loc_ref.dtype)

    coef_off = kd_pad
    if not delta:
        # scale = exp(fc_logscale(x)) + min_scale   (EUP exp, f32 VPU add)
        scale_ref[...] = (jnp.exp(out[:, kd_pad:2 * kd_pad]) + min_scale
                          ).astype(scale_ref.dtype)
        coef_off = 2 * kd_pad

    # Mixture log-coefficients + GMMDist normalization.  The K-padding mask is
    # baked into the packed bias (-1e30 on padded lanes) so no iota/where here.
    raw = out[:, coef_off:coef_off + k_pad]              # [TB, Kpad]
    m = jnp.max(raw, axis=-1, keepdims=True)
    lse = m + jnp.log(jnp.sum(jnp.exp(raw - m), axis=-1, keepdims=True))
    logc = raw - lse
    logcoef_ref[...] = logc
    coef_ref[...] = jnp.exp(logc)


def pack_gmm_cond_params(w_loc, b_loc, w_ls, b_ls, w_c, b_c, *,
                         components_num, output_dim, delta=False, use_bf16=True):
    """Pack per-head Linear params into one lane-dense [H, Npad] slab.

    Do this ONCE at parameter setup and reuse across forward calls (re-packing
    every call costs extra HBM passes over H*Npad that can rival the kernel).
    Weights are the pre-transposed torch Linear weights, i.e. shape [H, out].
    """
    K, D = components_num, output_dim
    KD = K * D
    kd_pad = _round_up(KD, _LANE)
    k_pad = _round_up(K, _LANE)
    compute_dtype = jnp.bfloat16 if use_bf16 else jnp.float32

    def pad_cols(a, n, npad, value=0.0):
        a = jnp.asarray(a, jnp.float32)
        return a if npad == n else jnp.pad(a, ((0, 0), (0, npad - n)),
                                           constant_values=value)

    w_segs = [pad_cols(w_loc, KD, kd_pad)]
    b_segs = [pad_cols(b_loc, KD, kd_pad)]
    if not delta:
        w_segs.append(pad_cols(w_ls, KD, kd_pad))
        b_segs.append(pad_cols(b_ls, KD, kd_pad))
    w_segs.append(pad_cols(w_c, K, k_pad))
    # Padded mixture lanes get -1e30: the in-kernel logsumexp then needs no mask
    # (weights in those lanes are zero so raw == -1e30 there).
    b_segs.append(pad_cols(b_c, K, k_pad, value=_NEG_INF))

    w_packed = jnp.concatenate(w_segs, axis=1).astype(compute_dtype)   # [H, Npad]
    b_packed = jnp.concatenate(b_segs, axis=1).astype(jnp.float32)     # [1, Npad]
    return w_packed, b_packed


def gmm_cond_layer_packed(x, w_packed, b_packed, *, components_num, output_dim,
                          min_scale=1e-10, delta=False,
                          loc_scale_dtype=jnp.float32):
    """Forward pass given pre-packed params (see pack_gmm_cond_params)."""
    B, H = x.shape
    K, D = components_num, output_dim
    KD = K * D
    kd_pad = _round_up(KD, _LANE)
    k_pad = _round_up(K, _LANE)
    n_pad = (kd_pad if delta else 2 * kd_pad) + k_pad
    assert w_packed.shape == (H, n_pad), (w_packed.shape, (H, n_pad))
    assert b_packed.shape == (1, n_pad)

    compute_dtype = w_packed.dtype
    w_itemsize = jnp.dtype(compute_dtype).itemsize
    ls_itemsize = jnp.dtype(loc_scale_dtype).itemsize
    x = jnp.asarray(x, jnp.float32)

    # --- VMEM sizing (drives tile_b) --------------------------------------
    n_loc_scale = (1 if delta else 2) * kd_pad
    out_row_bytes = n_loc_scale * ls_itemsize + 2 * k_pad * 4
    per_row_bytes = int(1.25 * (
        2 * H * 4                                               # f32 x tile, double-buffered
        + (H * 2 if compute_dtype == jnp.bfloat16 else 0)       # in-kernel bf16 x copy
        + n_pad * 4                                             # f32 matmul intermediate
        + 2 * out_row_bytes))                                   # double-buffered outputs
    weight_bytes = H * n_pad * w_itemsize                       # single-buffered slab
    bias_bytes = _SUBLANE * n_pad * 4                           # sublane-padded bias
    resident_bytes = weight_bytes + bias_bytes + (2 << 20)      # + Mosaic internal scratch

    vmem_cap = _vmem_capacity_bytes()
    vmem_budget = int(vmem_cap * 0.75)
    tile_b = _pick_tile_b(B, resident_bytes, per_row_bytes, vmem_budget)

    steps = pl.cdiv(B, tile_b)
    b_pad = steps * tile_b
    x_in = x if b_pad == B else jnp.pad(x, ((0, b_pad - B), (0, 0)))

    kernel = functools.partial(_gmm_cond_kernel, kd_pad=kd_pad, k_pad=k_pad,
                               min_scale=min_scale, delta=delta,
                               compute_dtype=compute_dtype)

    out_shapes = [jax.ShapeDtypeStruct((b_pad, kd_pad), loc_scale_dtype)]   # loc
    out_specs = [pl.BlockSpec((tile_b, kd_pad), lambda i: (i, 0))]
    if not delta:
        out_shapes.append(jax.ShapeDtypeStruct((b_pad, kd_pad), loc_scale_dtype))  # scale
        out_specs.append(pl.BlockSpec((tile_b, kd_pad), lambda i: (i, 0)))
    out_shapes += [jax.ShapeDtypeStruct((b_pad, k_pad), jnp.float32),       # logcoefs
                   jax.ShapeDtypeStruct((b_pad, k_pad), jnp.float32)]       # coefs
    out_specs += [pl.BlockSpec((tile_b, k_pad), lambda i: (i, 0)),
                  pl.BlockSpec((tile_b, k_pad), lambda i: (i, 0))]

    n_exp = (0 if delta else kd_pad) + 2 * k_pad
    cost = pl.CostEstimate(
        flops=2 * b_pad * H * n_pad,
        transcendentals=b_pad * n_exp,
        bytes_accessed=(x_in.size * 4 + w_packed.size * w_itemsize
                        + b_packed.size * 4 + b_pad * out_row_bytes),
    )

    def _build(single_buffer_weights):
        # Constant-index weight/bias slabs: single-buffered when supported
        # (halves their VMEM footprint), default-buffered otherwise.
        const_kw = ({"pipeline_mode": pl.Buffered(1)}
                    if single_buffer_weights else {})
        w_bufs = 1 if single_buffer_weights else 2
        in_specs = [
            pl.BlockSpec((tile_b, H), lambda i: (i, 0)),           # x tile, pipelined over B
            pl.BlockSpec((H, n_pad), lambda i: (0, 0), **const_kw),  # packed weights, resident
            pl.BlockSpec((1, n_pad), lambda i: (0, 0), **const_kw),  # packed bias, resident
        ]
        vmem_need = (w_bufs * weight_bytes + 2 * bias_bytes
                     + tile_b * per_row_bytes + (6 << 20))
        vmem_limit = int(min(vmem_cap, max(32 << 20, vmem_need)))
        return pl.pallas_call(
            kernel,
            out_shape=tuple(out_shapes),
            grid=(steps,),
            in_specs=in_specs,
            out_specs=tuple(out_specs),
            compiler_params=pltpu.CompilerParams(
                dimension_semantics=("parallel",),
                vmem_limit_bytes=vmem_limit),
            cost_estimate=cost,
        )

    try:
        outs = _build(True)(x_in, w_packed, b_packed)
    except Exception:
        # Fallback if single-buffered (pipeline_mode=Buffered(1)) constant
        # blocks are not supported by this jax/Mosaic version.
        outs = _build(False)(x_in, w_packed, b_packed)

    if delta:
        loc_pad, logc_pad, coef_pad = outs
        # Broadcastable constant; do not materialize a [B,K,D] HBM array.
        scale = jnp.asarray(min_scale, dtype=loc_scale_dtype)
    else:
        loc_pad, scale_pad, logc_pad, coef_pad = outs
        scale = scale_pad[:B, :KD].reshape(B, K, D)

    # [B, K*D] -> [B, K, D]: reshape only, no HBM transpose pass.
    loc = loc_pad[:B, :KD].reshape(B, K, D)
    logcoefs = logc_pad[:B, :K]
    coefs = coef_pad[:B, :K]
    return loc, scale, logcoefs, coefs


def gmm_cond_layer(x, w_loc, b_loc, w_ls, b_ls, w_c, b_c, *,
                   components_num, output_dim, min_scale=1e-10, delta=False,
                   use_bf16=True, loc_scale_dtype=jnp.float32):
    """Convenience wrapper: packs params then runs the kernel.

    For repeated inference, call pack_gmm_cond_params once and reuse
    gmm_cond_layer_packed to avoid re-packing weights every forward.
    """
    w_packed, b_packed = pack_gmm_cond_params(
        w_loc, b_loc, w_ls, b_ls, w_c, b_c,
        components_num=components_num, output_dim=output_dim,
        delta=delta, use_bf16=use_bf16)
    return gmm_cond_layer_packed(
        x, w_packed, b_packed, components_num=components_num,
        output_dim=output_dim, min_scale=min_scale, delta=delta,
        loc_scale_dtype=loc_scale_dtype)


def _reference(x, w_loc, b_loc, w_ls, b_ls, w_c, b_c,
               *, components_num, output_dim, min_scale, delta):
    B, H = x.shape
    K, D = components_num, output_dim
    loc = (x @ w_loc + b_loc).reshape(B, K, D)
    if delta:
        scale = jnp.float32(min_scale)
    else:
        scale = (jnp.exp(x @ w_ls + b_ls) + min_scale).reshape(B, K, D)
    raw = x @ w_c + b_c
    logc = raw - jax.nn.logsumexp(raw, axis=-1, keepdims=True)
    return loc, scale, logc, jnp.exp(logc)


if __name__ == "__main__":
    # Small deterministic problem: input_dim=32, output_dim=16, K=4.
    H, D, K = 32, 16, 4
    min_scale = 1e-10

    key = jax.random.PRNGKey(0)
    kx, k1, k2, k3, k4, k5, k6 = jax.random.split(key, 7)

    # Deterministic "torch-like" init: uniform(-1/sqrt(H), 1/sqrt(H)).
    bound = 1.0 / (H ** 0.5)
    u = lambda k, shape: jax.random.uniform(k, shape, jnp.float32, -bound, bound)
    w_loc = u(k1, (H, K * D))
    b_loc = u(k2, (1, K * D))
    w_ls = u(k3, (H, K * D))
    b_ls = u(k4, (1, K * D))
    w_c = u(k5, (H, K))
    b_c = u(k6, (1, K))

    cases = [
        dict(B=8, delta=False, use_bf16=False, atol=1e-5, rtol=1e-5),
        dict(B=8, delta=False, use_bf16=True, atol=3e-2, rtol=3e-2),
        dict(B=8, delta=True, use_bf16=False, atol=1e-5, rtol=1e-5),
        # Batch not a multiple of the tile -> exercises wrapper padding + slicing.
        dict(B=12, delta=False, use_bf16=False, atol=1e-5, rtol=1e-5),
    ]
    for case in cases:
        B = case["B"]
        x = jax.random.normal(kx, (B, H), dtype=jnp.float32)
        out = gmm_cond_layer(x, w_loc, b_loc, w_ls, b_ls, w_c, b_c,
                             components_num=K, output_dim=D,
                             min_scale=min_scale, delta=case["delta"],
                             use_bf16=case["use_bf16"])
        out = jax.block_until_ready(out)
        ref = _reference(x, w_loc, b_loc, w_ls, b_ls, w_c, b_c,
                         components_num=K, output_dim=D,
                         min_scale=min_scale, delta=case["delta"])
        for a, b in zip(out, ref):
            assert a.shape == b.shape, (a.shape, b.shape, case)
            assert jnp.allclose(a, b, atol=case["atol"], rtol=case["rtol"]), case

    print("KERNEL_OK")
</pallas_src>

<mosaic_0001>
module attributes {stable_mosaic.version = 11 : i64} {
  func.func @_gmm_cond_kernel(%arg0: i32, %arg1: memref<8x32xf32, #tpu.memory_space<vmem>>, %arg2: memref<32x384xf32, #tpu.memory_space<vmem>>, %arg3: memref<1x384xf32, #tpu.memory_space<vmem>>, %arg4: memref<8x128xf32, #tpu.memory_space<vmem>>, %arg5: memref<8x128xf32, #tpu.memory_space<vmem>>, %arg6: memref<8x128xf32, #tpu.memory_space<vmem>>, %arg7: memref<8x128xf32, #tpu.memory_space<vmem>>) attributes {dimension_semantics = [#tpu.dimension_semantics<parallel>], iteration_bounds = array<i64: 1>, scalar_prefetch = 0 : i64, scratch_operands = 0 : i64, tpu.core_type = #tpu.core_type<tc>, window_params = [{transform_indices = @transform_0, window_bounds = array<i64: 8, 32>}, {pipeline_mode = #tpu.pipeline_mode<synchronous>, transform_indices = @transform_1, window_bounds = array<i64: 32, 384>}, {pipeline_mode = #tpu.pipeline_mode<synchronous>, transform_indices = @transform_2, window_bounds = array<i64: 1, 384>}, {transform_indices = @transform_3, window_bounds = array<i64: 8, 128>}, {transform_indices = @transform_4, window_bounds = array<i64: 8, 128>}, {transform_indices = @transform_5, window_bounds = array<i64: 8, 128>}, {transform_indices = @transform_6, window_bounds = array<i64: 8, 128>}]} {
    %c0 = arith.constant 0 : index
    %c0_0 = arith.constant 0 : index
    %0 = vector.load %arg1[%c0, %c0_0] : memref<8x32xf32, #tpu.memory_space<vmem>>, vector<8x32xf32>
    %c0_1 = arith.constant 0 : index
    %c0_2 = arith.constant 0 : index
    %1 = vector.load %arg2[%c0_1, %c0_2] : memref<32x384xf32, #tpu.memory_space<vmem>>, vector<32x384xf32>
    %cst = arith.constant dense<0.000000e+00> : vector<8x384xf32>
    %2 = tpu.matmul %0, %1, %cst {dimension_numbers = #tpu.dot_dimension_numbers<[1], [0], [0], [1], [0, 0, 1, 1], [], []>} : vector<8x32xf32>, vector<32x384xf32>, vector<8x384xf32> -> vector<8x384xf32>
    %c0_3 = arith.constant 0 : index
    %c0_4 = arith.constant 0 : index
    %3 = vector.load %arg3[%c0_3, %c0_4] : memref<1x384xf32, #tpu.memory_space<vmem>>, vector<1x384xf32>
    %4 = vector.broadcast %3 : vector<1x384xf32> to vector<8x384xf32>
    %5 = arith.addf %2, %4 : vector<8x384xf32>
    %6 = vector.extract_strided_slice %5 {offsets = [0, 0], sizes = [8, 128], strides = [1, 1]} : vector<8x384xf32> to vector<8x128xf32>
    %c0_5 = arith.constant 0 : index
    %c0_6 = arith.constant 0 : index
    %7 = vector.load %arg4[%c0_5, %c0_6] : memref<8x128xf32, #tpu.memory_space<vmem>>, vector<8x128xf32>
    tpu.vector_store %arg4[%c0_5, %c0_6], %6 {strides = array<i32>} : memref<8x128xf32, #tpu.memory_space<vmem>>, vector<8x128xf32>,
    %8 = vector.extract_strided_slice %5 {offsets = [0, 128], sizes = [8, 128], strides = [1, 1]} : vector<8x384xf32> to vector<8x128xf32>
    %9 = math.exp %8 : vector<8x128xf32>
    %cst_7 = arith.constant 1.000000e-10 : f32
    %10 = vector.broadcast %cst_7 : f32 to vector<8x128xf32>
    %11 = arith.addf %9, %10 : vector<8x128xf32>
    %c0_8 = arith.constant 0 : index
    %c0_9 = arith.constant 0 : index
    %12 = vector.load %arg5[%c0_8, %c0_9] : memref<8x128xf32, #tpu.memory_space<vmem>>, vector<8x128xf32>
    tpu.vector_store %arg5[%c0_8, %c0_9], %11 {strides = array<i32>} : memref<8x128xf32, #tpu.memory_space<vmem>>, vector<8x128xf32>,
    %13 = vector.extract_strided_slice %5 {offsets = [0, 256], sizes = [8, 128], strides = [1, 1]} : vector<8x384xf32> to vector<8x128xf32>
    %cst_10 = arith.constant dense<0xFF800000> : vector<8xf32>
    %14 = vector.multi_reduction <maximumf>, %13, %cst_10 [1] : vector<8x128xf32> to vector<8xf32>
    %15 = vector.shape_cast %14 : vector<8xf32> to vector<8x1xf32>
    %16 = vector.broadcast %15 : vector<8x1xf32> to vector<8x128xf32>
    %17 = arith.subf %13, %16 : vector<8x128xf32>
    %18 = math.exp %17 : vector<8x128xf32>
    %cst_11 = arith.constant dense<0.000000e+00> : vector<8xf32>
    %19 = vector.multi_reduction <add>, %18, %cst_11 [1] : vector<8x128xf32> to vector<8xf32>
    %20 = vector.shape_cast %19 : vector<8xf32> to vector<8x1xf32>
    %21 = math.log %20 : vector<8x1xf32>
    %22 = arith.addf %15, %21 : vector<8x1xf32>
    %23 = vector.broadcast %22 : vector<8x1xf32> to vector<8x128xf32>
    %24 = arith.subf %13, %23 : vector<8x128xf32>
    %c0_12 = arith.constant 0 : index
    %c0_13 = arith.constant 0 : index
    %25 = vector.load %arg6[%c0_12, %c0_13] : memref<8x128xf32, #tpu.memory_space<vmem>>, vector<8x128xf32>
    tpu.vector_store %arg6[%c0_12, %c0_13], %24 {strides = array<i32>} : memref<8x128xf32, #tpu.memory_space<vmem>>, vector<8x128xf32>,
    %26 = math.exp %24 : vector<8x128xf32>
    %c0_14 = arith.constant 0 : index
    %c0_15 = arith.constant 0 : index
    %27 = vector.load %arg7[%c0_14, %c0_15] : memref<8x128xf32, #tpu.memory_space<vmem>>, vector<8x128xf32>
    tpu.vector_store %arg7[%c0_14, %c0_15], %26 {strides = array<i32>} : memref<8x128xf32, #tpu.memory_space<vmem>>, vector<8x128xf32>,
    return
  }
  func.func @transform_0(%arg0: i32) -> (i32, i32) {
    %c0_i32 = arith.constant 0 : i32
    %c0_i32_0 = arith.constant 0 : i32
    return %arg0, %c0_i32 : i32, i32
  }
  func.func @transform_1(%arg0: i32) -> (i32, i32) {
    %c0_i32 = arith.constant 0 : i32
    %c0_i32_0 = arith.constant 0 : i32
    %c0_i32_1 = arith.constant 0 : i32
    return %c0_i32, %c0_i32_0 : i32, i32
  }
  func.func @transform_2(%arg0: i32) -> (i32, i32) {
    %c0_i32 = arith.constant 0 : i32
    %c0_i32_0 = arith.constant 0 : i32
    %c0_i32_1 = arith.constant 0 : i32
    return %c0_i32, %c0_i32_0 : i32, i32
  }
  func.func @transform_3(%arg0: i32) -> (i32, i32) {
    %c0_i32 = arith.constant 0 : i32
    %c0_i32_0 = arith.constant 0 : i32
    return %arg0, %c0_i32 : i32, i32
  }
  func.func @transform_4(%arg0: i32) -> (i32, i32) {
    %c0_i32 = arith.constant 0 : i32
    %c0_i32_0 = arith.constant 0 : i32
    return %arg0, %c0_i32 : i32, i32
  }
  func.func @transform_5(%arg0: i32) -> (i32, i32) {
    %c0_i32 = arith.constant 0 : i32
    %c0_i32_0 = arith.constant 0 : i32
    return %arg0, %c0_i32 : i32, i32
  }
  func.func @transform_6(%arg0: i32) -> (i32, i32) {
    %c0_i32 = arith.constant 0 : i32
    %c0_i32_0 = arith.constant 0 : i32
    return %arg0, %c0_i32 : i32, i32
  }
}

module attributes {stable_mosaic.version = 11 : i64} {
  func.func @_gmm_cond_kernel(%arg0: i32, %arg1: memref<8x32xf32, #tpu.memory_space<vmem>>, %arg2: memref<32x384xf32, #tpu.memory_space<vmem>>, %arg3: memref<1x384xf32, #tpu.memory_space<vmem>>, %arg4: memref<8x128xf32, #tpu.memory_space<vmem>>, %arg5: memref<8x128xf32, #tpu.memory_space<vmem>>, %arg6: memref<8x128xf32, #tpu.memory_space<vmem>>, %arg7: memref<8x128xf32, #tpu.memory_space<vmem>>) attributes {dimension_semantics = [#tpu.dimension_semantics<parallel>], iteration_bounds = array<i64: 1>, scalar_prefetch = 0 : i64, scratch_operands = 0 : i64, tpu.core_type = #tpu.core_type<tc>, window_params = [{transform_indices = @transform_0, window_bounds = array<i64: 8, 32>}, {pipeline_mode = #tpu.pipeline_mode<synchronous>, transform_indices = @transform_1, window_bounds = array<i64: 32, 384>}, {pipeline_mode = #tpu.pipeline_mode<synchronous>, transform_indices = @transform_2, window_bounds = array<i64: 1, 384>}, {transform_indices = @transform_3, window_bounds = array<i64: 8, 128>}, {transform_indices = @transform_4, window_bounds = array<i64: 8, 128>}, {transform_indices = @transform_5, window_bounds = array<i64: 8, 128>}, {transform_indices = @transform_6, window_bounds = array<i64: 8, 128>}]} {
    %c0 = arith.constant 0 : index
    %c0_0 = arith.constant 0 : index
    %0 = vector.load %arg1[%c0, %c0_0] : memref<8x32xf32, #tpu.memory_space<vmem>>, vector<8x32xf32>
    %c0_1 = arith.constant 0 : index
    %c0_2 = arith.constant 0 : index
    %1 = vector.load %arg2[%c0_1, %c0_2] : memref<32x384xf32, #tpu.memory_space<vmem>>, vector<32x384xf32>
    %cst = arith.constant dense<0.000000e+00> : vector<8x384xf32>
    %2 = tpu.matmul %0, %1, %cst {dimension_numbers = #tpu.dot_dimension_numbers<[1], [0], [0], [1], [0, 0, 1, 1], [], []>} : vector<8x32xf32>, vector<32x384xf32>, vector<8x384xf32> -> vector<8x384xf32>
    %c0_3 = arith.constant 0 : index
    %c0_4 = arith.constant 0 : index
    %3 = vector.load %arg3[%c0_3, %c0_4] : memref<1x384xf32, #tpu.memory_space<vmem>>, vector<1x384xf32>
    %4 = vector.broadcast %3 : vector<1x384xf32> to vector<8x384xf32>
    %5 = arith.addf %2, %4 : vector<8x384xf32>
    %6 = vector.extract_strided_slice %5 {offsets = [0, 0], sizes = [8, 128], strides = [1, 1]} : vector<8x384xf32> to vector<8x128xf32>
    %c0_5 = arith.constant 0 : index
    %c0_6 = arith.constant 0 : index
    %7 = vector.load %arg4[%c0_5, %c0_6] : memref<8x128xf32, #tpu.memory_space<vmem>>, vector<8x128xf32>
    tpu.vector_store %arg4[%c0_5, %c0_6], %6 {strides = array<i32>} : memref<8x128xf32, #tpu.memory_space<vmem>>, vector<8x128xf32>,
    %8 = vector.extract_strided_slice %5 {offsets = [0, 128], sizes = [8, 128], strides = [1, 1]} : vector<8x384xf32> to vector<8x128xf32>
    %9 = math.exp %8 : vector<8x128xf32>
    %cst_7 = arith.constant 1.000000e-10 : f32
    %10 = vector.broadcast %cst_7 : f32 to vector<8x128xf32>
    %11 = arith.addf %9, %10 : vector<8x128xf32>
    %c0_8 = arith.constant 0 : index
    %c0_9 = arith.constant 0 : index
    %12 = vector.load %arg5[%c0_8, %c0_9] : memref<8x128xf32, #tpu.memory_space<vmem>>, vector<8x128xf32>
    tpu.vector_store %arg5[%c0_8, %c0_9], %11 {strides = array<i32>} : memref<8x128xf32, #tpu.memory_space<vmem>>, vector<8x128xf32>,
    %13 = vector.extract_strided_slice %5 {offsets = [0, 256], sizes = [8, 128], strides = [1, 1]} : vector<8x384xf32> to vector<8x128xf32>
    %cst_10 = arith.constant dense<0xFF800000> : vector<8xf32>
    %14 = vector.multi_reduction <maximumf>, %13, %cst_10 [1] : vector<8x128xf32> to vector<8xf32>
    %15 = vector.shape_cast %14 : vector<8xf32> to vector<8x1xf32>
    %16 = vector.broadcast %15 : vector<8x1xf32> to vector<8x128xf32>
    %17 = arith.subf %13, %16 : vector<8x128xf32>
    %18 = math.exp %17 : vector<8x128xf32>
    %cst_11 = arith.constant dense<0.000000e+00> : vector<8xf32>
    %19 = vector.multi_reduction <add>, %18, %cst_11 [1] : vector<8x128xf32> to vector<8xf32>
    %20 = vector.shape_cast %19 : vector<8xf32> to vector<8x1xf32>
    %21 = math.log %20 : vector<8x1xf32>
    %22 = arith.addf %15, %21 : vector<8x1xf32>
    %23 = vector.broadcast %22 : vector<8x1xf32> to vector<8x128xf32>
    %24 = arith.subf %13, %23 : vector<8x128xf32>
    %c0_12 = arith.constant 0 : index
    %c0_13 = arith.constant 0 : index
    %25 = vector.load %arg6[%c0_12, %c0_13] : memref<8x128xf32, #tpu.memory_space<vmem>>, vector<8x128xf32>
    tpu.vector_store %arg6[%c0_12, %c0_13], %24 {strides = array<i32>} : memref<8x128xf32, #tpu.memory_space<vmem>>, vector<8x128xf32>,
    %26 = math.exp %24 : vector<8x128xf32>
    %c0_14 = arith.constant 0 : index
    %c0_15 = arith.constant 0 : index
    %27 = vector.load %arg7[%c0_14, %c0_15] : memref<8x128xf32, #tpu.memory_space<vmem>>, vector<8x128xf32>
    tpu.vector_store %arg7[%c0_14, %c0_15], %26 {strides = array<i32>} : memref<8x128xf32, #tpu.memory_space<vmem>>, vector<8x128xf32>,
    return
  }
  func.func @transform_0(%arg0: i32) -> (i32, i32) {
    %c0_i32 = arith.constant 0 : i32
    %c0_i32_0 = arith.constant 0 : i32
    return %arg0, %c0_i32 : i32, i32
  }
  func.func @transform_1(%arg0: i32) -> (i32, i32) {
    %c0_i32 = arith.constant 0 : i32
    %c0_i32_0 = arith.constant 0 : i32
    %c0_i32_1 = arith.constant 0 : i32
    return %c0_i32, %c0_i32_0 : i32, i32
  }
  func.func @transform_2(%arg0: i32) -> (i32, i32) {
    %c0_i32 = arith.constant 0 : i32
    %c0_i32_0 = arith.constant 0 : i32
    %c0_i32_1 = arith.constant 0 : i32
    return %c0_i32, %c0_i32_0 : i32, i32
  }
  func.func @transform_3(%arg0: i32) -> (i32, i32) {
    %c0_i32 = arith.constant 0 : i32
    %c0_i32_0 = arith.constant 0 : i32
    return %arg0, %c0_i32 : i32, i32
  }
  func.func @transform_4(%arg0: i32) -> (i32, i32) {
    %c0_i32 = arith.constant 0 : i32
    %c0_i32_0 = arith.constant 0 : i32
    return %arg0, %c0_i32 : i32, i32
  }
  func.func @transform_5(%arg0: i32) -> (i32, i32) {
    %c0_i32 = arith.constant 0 : i32
    %c0_i32_0 = arith.constant 0 : i32
    return %arg0, %c0_i32 : i32, i32
  }
  func.func @transform_6(%arg0: i32) -> (i32, i32) {
    %c0_i32 = arith.constant 0 : i32
    %c0_i32_0 = arith.constant 0 : i32
    return %arg0, %c0_i32 : i32, i32
  }
}

</mosaic_0001>

<bundles_post_ra>
// kernel: tpu_custom_call.1
= control target key start
LH: loop header
LB: loop body
LE: loop exit
PB: predicated region body
PF: predicated region fallthrough
CT: control target
= control target key end

     0   :  { %12 = vsyncpa [#allocation3], 0  ;;  %s500_s0 = inlined_call_operand.hbm [shape: f32[8,32], index: 0, kind: input, shape index: {}]   ;;  %s501_s1 = inlined_call_operand.hbm [shape: f32[32,384], index: 1, kind: input, shape index: {}]   ;;  %s502_s2 = inlined_call_operand.hbm [shape: f32[1,384], index: 2, kind: input, shape index: {}]   ;;  %s503_s3 = inlined_call_operand.hbm [shape: f32[8,128], index: 3, kind: output, shape index: {0}]   ;;  %s504_s4 = inlined_call_operand.hbm [shape: f32[8,128], index: 4, kind: output, shape index: {1}]   ;;  %s505_s5 = inlined_call_operand.hbm [shape: f32[8,128], index: 5, kind: output, shape index: {2}]   ;;  %s506_s6 = inlined_call_operand.hbm [shape: f32[8,128], index: 6, kind: output, shape index: {3}]  }
   0x1   :  { %13 = vsyncpa [#allocation6], 0 }
   0x2   :  { %14 = vsyncpa [#allocation4], 0 }
   0x3   :  { %15 = vsyncpa [#allocation10], 0  ;;  %s32_s23 = sshll.u32 %s501_s1, 4  ;;  %s33_s23 = int_to_ptr.hbm [resolvable:$true] %s32_s23 }
   0x4   :  { %16 = vsyncpa [#allocation13], 0  ;;  %s432_s24 = smov [#allocation5]   ;;  %s22_s28 = sshll.u32 %s500_s0, 4  ;;  %s23_s28 = int_to_ptr.hbm [resolvable:$true] %s22_s28 }
   0x5   :  { %s34_s25 = sshll.u32 %s432_s24, 4  ;;  %s433_s29 = smov 384   ;;  %s35_s25 = int_to_ptr.vmem [resolvable:$true] %s34_s25 }
   0x6   :  { %s434_s30 = smov 24   ;;  %s435_s7 = smov [#allocation2]  }
   0x7   :  { %40 = dma.hbm_to_vmem [thread:$0]  %s33_s23, 1536, %s35_s25, [#allocation6], %s433_s29, %s433_s29, %s434_s30  }
   0x8   :  { %s24_s8 = sshll.u32 %s435_s7, 4  ;;  %s46_s11 = sshll.u32 %s502_s2, 4  ;;  %s25_s8 = int_to_ptr.vmem [resolvable:$true] %s24_s8  ;;  %s47_s11 = int_to_ptr.hbm [resolvable:$true] %s46_s11 }
   0x9   :  { %27 = dma.hbm_to_vmem [thread:$0]  %s23_s28, 128, %s25_s8, [#allocation3]  }
   0xa   :  { %s436_s1 = smov [#allocation7]  }
   0xb   :  { %s48_s12 = sshll.u32 %s436_s1, 4  ;;  %s49_s12 = int_to_ptr.vmem [resolvable:$true] %s48_s12 }
   0xc   :  { %51 = dma.hbm_to_vmem [thread:$0]  %s47_s11, 48, %s49_s12, [#allocation6]  }
   0xd   :  { %422 = dma.done.wait [#allocation3], 128  }
   0xe   :  { %423 = vsyncadd [#allocation3], 4294967168 }
   0xf   :  { %424 = dma.done.wait [#allocation6], 1584  }
  0x10   :  { %425 = vsyncadd [#allocation6], 4294965712  ;;  %v76_v0 = vld [vmem:[#allocation5 + $0x58] sm:$0xff]  ;;  %v73_v1 = vld [vmem:[#allocation5 + $0x40] sm:$0xff]  ;;  %vm85_vm0 = vcmask 261120   ;;  %s437_s0 = smov [#allocation9]  }
  0x11   :  { %141 = vmatpush.msra.mxu2 %v76_v0  ;;  %v70_v2 = vld [vmem:[#allocation5 + $0x28] sm:$0xff]  ;;  %v67_v3 = vld [vmem:[#allocation5 + $0x10] sm:$0xff]  ;;  %v64_v4 = vld [vmem:[#allocation2] sm:$0xff]  ;;  %s185_s2 = sshll.u32 %s437_s0, 4  ;;  %s187_s15 = sshll.u32 %s504_s4, 4  ;;  %s186_s2 = int_to_ptr.vmem [resolvable:$true] %s185_s2  ;;  %s188_s15 = int_to_ptr.hbm [resolvable:$true] %s187_s15 }
  0x12   :  { %v77_v5 = vld [vmem:[#allocation7] sm:$0x7]  ;;  %v75_v9 = vld [vmem:[#allocation5 + $0x50] sm:$0xff]  ;;  %v72_v10 = vld [vmem:[#allocation5 + $0x38] sm:$0xff]  ;;  %s438_s16 = smov [#allocation8]   ;;  %s176_s20 = sshll.u32 %s503_s3, 4  ;;  %s177_s20 = int_to_ptr.hbm [resolvable:$true] %s176_s20 }
  0x13   :  { %142 = vmatpush.msra.mxu2 %v73_v1  ;;  %v81_v6 = vperm.slane %v77_v5, 2  ;;  %121 = vmatpush.msra.mxu1 %v75_v9  ;;  %v69_v11 = vld [vmem:[#allocation5 + $0x20] sm:$0xff]  ;;  %v66_v12 = vld [vmem:[#allocation5 + $0x8] sm:$0xff]  ;;  %v71_v14 = vld [vmem:[#allocation5 + $0x30] sm:$0xff]  ;;  %v80_v21 = vperm.slane %v77_v5, 1  ;;  %s174_s17 = sshll.u32 %s438_s16, 4  ;;  %s175_s17 = int_to_ptr.vmem [resolvable:$true] %s174_s17 }
  0x14   :  { %v74_v13 = vld [vmem:[#allocation5 + $0x48] sm:$0xff]  ;;  %v68_v15 = vld [vmem:[#allocation5 + $0x18] sm:$0xff]  ;;  %v65_v16 = vld [vmem:[#allocation5] sm:$0xff]  ;;  %v79_v26 = vperm.slane %v77_v5, 0  ;;  %s439_s4 = smov [#allocation11]   ;;  %s198_s23 = sshll.u32 %s505_s5, 4  ;;  %s199_s23 = int_to_ptr.hbm [resolvable:$true] %s198_s23 }
  0x15   :  { %143 = vmatpush.msra.mxu2 %v70_v2  ;;  %122 = vmatpush.msra.mxu1 %v72_v10  ;;  %s196_s21 = sshll.u32 %s439_s4, 4  ;;  %s440_s24 = smov [#allocation12]   ;;  %s197_s21 = int_to_ptr.vmem [resolvable:$true] %s196_s21 }
  0x16   :  { %101 = vmatpush.msra.mxu0 %v74_v13  ;;  %s207_s25 = sshll.u32 %s440_s24, 4  ;;  %s209_s28 = sshll.u32 %s506_s6, 4  ;;  %s208_s25 = int_to_ptr.vmem [resolvable:$true] %s207_s25  ;;  %s210_s28 = int_to_ptr.hbm [resolvable:$true] %s209_s28 }
  0x17   :  { %144 = vmatpush.msra.mxu2 %v67_v3  ;;  %123 = vmatpush.msra.mxu1 %v69_v11 }
  0x18   :  { %236 = vmatmul.msk.f32.vlgmr.msra.gmra.mxu2 %vm85_vm0, %v64_v4  ;;  %102 = vmatpush.msra.mxu0 %v71_v14 }
  0x19   :  { %124 = vmatpush.msra.mxu1 %v66_v12 }
  0x1a   :  { %235 = vmatmul.msk.f32.vlgmr.msra.gmra.mxu1 %vm85_vm0, %v64_v4  ;;  %103 = vmatpush.msra.mxu0 %v68_v15 }
  0x1c   :  { %104 = vmatpush.msra.mxu0 %v65_v16 }
  0x1d   :  { %234 = vmatmul.msk.f32.vlgmr.msra.gmra.mxu0 %vm85_vm0, %v64_v4 }
  0x97   :  { %v126_v22 = vpop.f32.mrf.mxu1 }
  0x98   :  { %v127_v23 = vadd.f32 %v126_v22, %v80_v21 }
  0x9a   :  { %v150_v24 = vmul.f32 1.442695, %v127_v23  ;;  %v106_v28 = vpop.f32.mrf.mxu0 }
  0x9b   :  { %v146_v7 = vpop.f32.mrf.mxu2  ;;  %v107_v29 = vadd.f32 %v106_v28, %v79_v26 }
  0x9c   :  { %v147_v8 = vadd.f32 %v146_v7, %v81_v6 }
  0x9d   :  { %149 = vst [vmem:[#allocation8] sm:$0xff] %v107_v29 }
  0x9e   :  { %154 = vmax.xlane.f32.xlu0 %v147_v8  ;;  %179 = dma.vmem_to_hbm [thread:$0]  %s175_s17, 128, %s177_s20, [#allocation4]  }
 0x111   :  { %v155_v17 = vpop.xlane.xlu0 %154 }
 0x112   :  { %v156_v18 = vsub.f32 %v147_v8, %v155_v17 }
 0x114   :  { %v157_v19 = vmul.f32 1.442695, %v156_v18 }
 0x116   :  { %246 = vpow2.f32 %v157_v19 }
 0x117   :  { %248 = vpow2.f32 %v150_v24 }
 0x11c   :  { %v247_v20 = vpop.eup %246 }
 0x11d   :  { %159 = vadd.xlane.f32.xlu0 %v247_v20  ;;  %v249_v25 = vpop.eup %248 }
 0x11e   :  { %v152_v27 = vadd.f32 1e-10, %v249_v25 }
 0x120   :  { %153 = vst [vmem:[#allocation9] sm:$0xff] %v152_v27 }
 0x121   :  { %190 = dma.vmem_to_hbm [thread:$0]  %s186_s2, 128, %s188_s15, [#allocation10]  }
 0x190   :  { %v160_v30 = vpop.xlane.xlu0 %159 }
 0x191   :  { %250 = vlog2.f32 %v160_v30 }
 0x197   :  { %v251_v31 = vpop.eup %250 }
 0x198   :  { %v162_v32 = vmul.f32 0.6931472, %v251_v31 }
 0x19a   :  { %v163_v33 = vadd.f32 %v162_v32, %v155_v17 }
 0x19c   :  { %v164_v34 = vsub.f32 %v147_v8, %v163_v33 }
 0x19e   :  { %v166_v35 = vmul.f32 1.442695, %v164_v34  ;;  %165 = vst [vmem:[#allocation11] sm:$0xff] %v164_v34 }
 0x19f   :  { %201 = dma.vmem_to_hbm [thread:$0]  %s197_s21, 128, %s199_s23, [#allocation10]  }
 0x1a0   :  { %252 = vpow2.f32 %v166_v35 }
 0x1a6   :  { %v253_v36 = vpop.eup %252 }
 0x1a7   :  { %168 = vst [vmem:[#allocation12] sm:$0xff] %v253_v36 }
 0x1a8   :  { %212 = dma.vmem_to_hbm [thread:$0]  %s208_s25, 128, %s210_s28, [#allocation13]  }
 0x1a9   :  { %426 = dma.done.wait [#allocation4], 128  }
 0x1aa   :  { %427 = vsyncadd [#allocation4], 4294967168 }
 0x1ab   :  { %428 = dma.done.wait [#allocation10], 256  }
 0x1ac   :  { %429 = vsyncadd [#allocation10], 4294967040 }
 0x1ad   :  { %430 = dma.done.wait [#allocation13], 128  }
 0x1ae   :  { %431 = vsyncadd [#allocation13], 4294967168 }
 0x1af   :  { %229 = vsyncpa [#allocation3], 1 }
 0x1b0   :  { %230 = vsyncpa [#allocation6], 1 }
 0x1b1   :  { %231 = vsyncpa [#allocation4], 1 }
 0x1b2   :  { %232 = vsyncpa [#allocation10], 1 }
 0x1b3   :  { %233 = vsyncpa [#allocation13], 1 }

// kernel: tpu_custom_call.1
= control target key start
LH: loop header
LB: loop body
LE: loop exit
PB: predicated region body
PF: predicated region fallthrough
CT: control target
= control target key end

     0   :  { %12 = vsyncpa [#allocation3], 0  ;;  %s500_s0 = inlined_call_operand.hbm [shape: f32[8,32], index: 0, kind: input, shape index: {}]   ;;  %s501_s1 = inlined_call_operand.hbm [shape: f32[32,384], index: 1, kind: input, shape index: {}]   ;;  %s502_s2 = inlined_call_operand.hbm [shape: f32[1,384], index: 2, kind: input, shape index: {}]   ;;  %s503_s3 = inlined_call_operand.hbm [shape: f32[8,128], index: 3, kind: output, shape index: {0}]   ;;  %s504_s4 = inlined_call_operand.hbm [shape: f32[8,128], index: 4, kind: output, shape index: {1}]   ;;  %s505_s5 = inlined_call_operand.hbm [shape: f32[8,128], index: 5, kind: output, shape index: {2}]   ;;  %s506_s6 = inlined_call_operand.hbm [shape: f32[8,128], index: 6, kind: output, shape index: {3}]  }
   0x1   :  { %13 = vsyncpa [#allocation6], 0 }
   0x2   :  { %14 = vsyncpa [#allocation4], 0 }
   0x3   :  { %15 = vsyncpa [#allocation10], 0  ;;  %s32_s23 = sshll.u32 %s501_s1, 4  ;;  %s33_s23 = int_to_ptr.hbm [resolvable:$true] %s32_s23 }
   0x4   :  { %16 = vsyncpa [#allocation13], 0  ;;  %s432_s24 = smov [#allocation5]   ;;  %s22_s28 = sshll.u32 %s500_s0, 4  ;;  %s23_s28 = int_to_ptr.hbm [resolvable:$true] %s22_s28 }
   0x5   :  { %s34_s25 = sshll.u32 %s432_s24, 4  ;;  %s433_s29 = smov 384   ;;  %s35_s25 = int_to_ptr.vmem [resolvable:$true] %s34_s25 }
   0x6   :  { %s434_s30 = smov 24   ;;  %s435_s7 = smov [#allocation2]  }
   0x7   :  { %40 = dma.hbm_to_vmem [thread:$0]  %s33_s23, 1536, %s35_s25, [#allocation6], %s433_s29, %s433_s29, %s434_s30  }
   0x8   :  { %s24_s8 = sshll.u32 %s435_s7, 4  ;;  %s46_s11 = sshll.u32 %s502_s2, 4  ;;  %s25_s8 = int_to_ptr.vmem [resolvable:$true] %s24_s8  ;;  %s47_s11 = int_to_ptr.hbm [resolvable:$true] %s46_s11 }
   0x9   :  { %27 = dma.hbm_to_vmem [thread:$0]  %s23_s28, 128, %s25_s8, [#allocation3]  }
   0xa   :  { %s436_s1 = smov [#allocation7]  }
   0xb   :  { %s48_s12 = sshll.u32 %s436_s1, 4  ;;  %s49_s12 = int_to_ptr.vmem [resolvable:$true] %s48_s12 }
   0xc   :  { %51 = dma.hbm_to_vmem [thread:$0]  %s47_s11, 48, %s49_s12, [#allocation6]  }
   0xd   :  { %422 = dma.done.wait [#allocation3], 128  }
   0xe   :  { %423 = vsyncadd [#allocation3], 4294967168 }
   0xf   :  { %424 = dma.done.wait [#allocation6], 1584  }
  0x10   :  { %425 = vsyncadd [#allocation6], 4294965712  ;;  %v76_v0 = vld [vmem:[#allocation5 + $0x58] sm:$0xff]  ;;  %v73_v1 = vld [vmem:[#allocation5 + $0x40] sm:$0xff]  ;;  %vm85_vm0 = vcmask 261120   ;;  %s437_s0 = smov [#allocation9]  }
  0x11   :  { %141 = vmatpush.msra.mxu2 %v76_v0  ;;  %v70_v2 = vld [vmem:[#allocation5 + $0x28] sm:$0xff]  ;;  %v67_v3 = vld [vmem:[#allocation5 + $0x10] sm:$0xff]  ;;  %v64_v4 = vld [vmem:[#allocation2] sm:$0xff]  ;;  %s185_s2 = sshll.u32 %s437_s0, 4  ;;  %s187_s15 = sshll.u32 %s504_s4, 4  ;;  %s186_s2 = int_to_ptr.vmem [resolvable:$true] %s185_s2  ;;  %s188_s15 = int_to_ptr.hbm [resolvable:$true] %s187_s15 }
  0x12   :  { %v77_v5 = vld [vmem:[#allocation7] sm:$0x7]  ;;  %v75_v9 = vld [vmem:[#allocation5 + $0x50] sm:$0xff]  ;;  %v72_v10 = vld [vmem:[#allocation5 + $0x38] sm:$0xff]  ;;  %s438_s16 = smov [#allocation8]   ;;  %s176_s20 = sshll.u32 %s503_s3, 4  ;;  %s177_s20 = int_to_ptr.hbm [resolvable:$true] %s176_s20 }
  0x13   :  { %142 = vmatpush.msra.mxu2 %v73_v1  ;;  %v81_v6 = vperm.slane %v77_v5, 2  ;;  %121 = vmatpush.msra.mxu1 %v75_v9  ;;  %v69_v11 = vld [vmem:[#allocation5 + $0x20] sm:$0xff]  ;;  %v66_v12 = vld [vmem:[#allocation5 + $0x8] sm:$0xff]  ;;  %v71_v14 = vld [vmem:[#allocation5 + $0x30] sm:$0xff]  ;;  %v80_v21 = vperm.slane %v77_v5, 1  ;;  %s174_s17 = sshll.u32 %s438_s16, 4  ;;  %s175_s17 = int_to_ptr.vmem [resolvable:$true] %s174_s17 }
  0x14   :  { %v74_v13 = vld [vmem:[#allocation5 + $0x48] sm:$0xff]  ;;  %v68_v15 = vld [vmem:[#allocation5 + $0x18] sm:$0xff]  ;;  %v65_v16 = vld [vmem:[#allocation5] sm:$0xff]  ;;  %v79_v26 = vperm.slane %v77_v5, 0  ;;  %s439_s4 = smov [#allocation11]   ;;  %s198_s23 = sshll.u32 %s505_s5, 4  ;;  %s199_s23 = int_to_ptr.hbm [resolvable:$true] %s198_s23 }
  0x15   :  { %143 = vmatpush.msra.mxu2 %v70_v2  ;;  %122 = vmatpush.msra.mxu1 %v72_v10  ;;  %s196_s21 = sshll.u32 %s439_s4, 4  ;;  %s440_s24 = smov [#allocation12]   ;;  %s197_s21 = int_to_ptr.vmem [resolvable:$true] %s196_s21 }
  0x16   :  { %101 = vmatpush.msra.mxu0 %v74_v13  ;;  %s207_s25 = sshll.u32 %s440_s24, 4  ;;  %s209_s28 = sshll.u32 %s506_s6, 4  ;;  %s208_s25 = int_to_ptr.vmem [resolvable:$true] %s207_s25  ;;  %s210_s28 = int_to_ptr.hbm [resolvable:$true] %s209_s28 }
  0x17   :  { %144 = vmatpush.msra.mxu2 %v67_v3  ;;  %123 = vmatpush.msra.mxu1 %v69_v11 }
  0x18   :  { %236 = vmatmul.msk.f32.vlgmr.msra.gmra.mxu2 %vm85_vm0, %v64_v4  ;;  %102 = vmatpush.msra.mxu0 %v71_v14 }
  0x19   :  { %124 = vmatpush.msra.mxu1 %v66_v12 }
  0x1a   :  { %235 = vmatmul.msk.f32.vlgmr.msra.gmra.mxu1 %vm85_vm0, %v64_v4  ;;  %103 = vmatpush.msra.mxu0 %v68_v15 }
  0x1c   :  { %104 = vmatpush.msra.mxu0 %v65_v16 }
  0x1d   :  { %234 = vmatmul.msk.f32.vlgmr.msra.gmra.mxu0 %vm85_vm0, %v64_v4 }
  0x97   :  { %v126_v22 = vpop.f32.mrf.mxu1 }
  0x98   :  { %v127_v23 = vadd.f32 %v126_v22, %v80_v21 }
  0x9a   :  { %v150_v24 = vmul.f32 1.442695, %v127_v23  ;;  %v106_v28 = vpop.f32.mrf.mxu0 }
  0x9b   :  { %v146_v7 = vpop.f32.mrf.mxu2  ;;  %v107_v29 = vadd.f32 %v106_v28, %v79_v26 }
  0x9c   :  { %v147_v8 = vadd.f32 %v146_v7, %v81_v6 }
  0x9d   :  { %149 = vst [vmem:[#allocation8] sm:$0xff] %v107_v29 }
  0x9e   :  { %154 = vmax.xlane.f32.xlu0 %v147_v8  ;;  %179 = dma.vmem_to_hbm [thread:$0]  %s175_s17, 128, %s177_s20, [#allocation4]  }
 0x111   :  { %v155_v17 = vpop.xlane.xlu0 %154 }
 0x112   :  { %v156_v18 = vsub.f32 %v147_v8, %v155_v17 }
 0x114   :  { %v157_v19 = vmul.f32 1.442695, %v156_v18 }
 0x116   :  { %246 = vpow2.f32 %v157_v19 }
 0x117   :  { %248 = vpow2.f32 %v150_v24 }
 0x11c   :  { %v247_v20 = vpop.eup %246 }
 0x11d   :  { %159 = vadd.xlane.f32.xlu0 %v247_v20  ;;  %v249_v25 = vpop.eup %248 }
 0x11e   :  { %v152_v27 = vadd.f32 1e-10, %v249_v25 }
 0x120   :  { %153 = vst [vmem:[#allocation9] sm:$0xff] %v152_v27 }
 0x121   :  { %190 = dma.vmem_to_hbm [thread:$0]  %s186_s2, 128, %s188_s15, [#allocation10]  }
 0x190   :  { %v160_v30 = vpop.xlane.xlu0 %159 }
 0x191   :  { %250 = vlog2.f32 %v160_v30 }
 0x197   :  { %v251_v31 = vpop.eup %250 }
 0x198   :  { %v162_v32 = vmul.f32 0.6931472, %v251_v31 }
 0x19a   :  { %v163_v33 = vadd.f32 %v162_v32, %v155_v17 }
 0x19c   :  { %v164_v34 = vsub.f32 %v147_v8, %v163_v33 }
 0x19e   :  { %v166_v35 = vmul.f32 1.442695, %v164_v34  ;;  %165 = vst [vmem:[#allocation11] sm:$0xff] %v164_v34 }
 0x19f   :  { %201 = dma.vmem_to_hbm [thread:$0]  %s197_s21, 128, %s199_s23, [#allocation10]  }
 0x1a0   :  { %252 = vpow2.f32 %v166_v35 }
 0x1a6   :  { %v253_v36 = vpop.eup %252 }
 0x1a7   :  { %168 = vst [vmem:[#allocation12] sm:$0xff] %v253_v36 }
 0x1a8   :  { %212 = dma.vmem_to_hbm [thread:$0]  %s208_s25, 128, %s210_s28, [#allocation13]  }
 0x1a9   :  { %426 = dma.done.wait [#allocation4], 128  }
 0x1aa   :  { %427 = vsyncadd [#allocation4], 4294967168 }
 0x1ab   :  { %428 = dma.done.wait [#allocation10], 256  }
 0x1ac   :  { %429 = vsyncadd [#allocation10], 4294967040 }
 0x1ad   :  { %430 = dma.done.wait [#allocation13], 128  }
 0x1ae   :  { %431 = vsyncadd [#allocation13], 4294967168 }
 0x1af   :  { %229 = vsyncpa [#allocation3], 1 }
 0x1b0   :  { %230 = vsyncpa [#allocation6], 1 }
 0x1b1   :  { %231 = vsyncpa [#allocation4], 1 }
 0x1b2   :  { %232 = vsyncpa [#allocation10], 1 }
 0x1b3   :  { %233 = vsyncpa [#allocation13], 1 }

</bundles_post_ra>
